<compile_context>
chip_gen: v6e
topology: v6e:2x2x1
jax: 0.10.0
libtpu: 0.0.40
codegen_flags: <defaults>
</compile_context>

<pallas_src>
import functools

import jax
import jax.numpy as jnp
from jax.experimental import pallas as pl
from jax.experimental.pallas import tpu as pltpu

EPS = 0.01  # BatchNorm1d eps from the module


def svm_kernel(xs_ref, xf_ref, w_ref, b_ref, out_ref, *, n_stat, n_chan):
    # --- BatchNorm1d statistics (training mode, biased variance), one sweep ---
    xs = xs_ref[...]                                   # (B*C, T)
    inv_n = 1.0 / float(n_stat)
    s1 = jnp.sum(xs, axis=0, keepdims=True)            # (1, T)
    s2 = jnp.sum(xs * xs, axis=0, keepdims=True)       # (1, T)
    mean = s1 * inv_n                                  # (1, T)
    var = s2 * inv_n - mean * mean                     # E[x^2] - mean^2
    inv = jax.lax.rsqrt(var + EPS)                     # (1, T)
    shift = -mean * inv                                # (1, T)

    # Broadcast the per-t scale/shift to the flattened feature order f = c*T + t
    # (C lane-concats of a 16-lane slab; gamma/beta already folded host-side).
    scale_f = jnp.concatenate([inv] * n_chan, axis=-1)     # (1, C*T)
    shift_f = jnp.concatenate([shift] * n_chan, axis=-1)   # (1, C*T)

    # --- Normalize (x - mean) * inv on the lane-dense copy, then one matmul ---
    xn = xf_ref[...] * scale_f + shift_f               # (B, C*T)
    out_ref[...] = (
        jnp.dot(xn, w_ref[...], preferred_element_type=jnp.float32)
        + b_ref[...]
    )


def svm_forward(x1, x2, gamma, beta, W, b):
    """Returns (logits, None), mirroring the torch module's forward."""
    B, C1, T = x1.shape
    C2 = x2.shape[1]
    C = C1 + C2
    nclass = W.shape[0]

    # Host-side concat + both layouts (free reshapes of the same buffer).
    x = jnp.concatenate([x1, x2], axis=1)              # (B, C, T)
    xs = x.reshape(B * C, T)                           # stats operand
    xf = x.reshape(B, C * T)                           # lane-dense matmul operand

    # Torch flatten order is feature = c*T + t, so W.T reshaped to (C, T, nclass)
    # puts the per-channel weight slabs in the right order.  Fold gamma into the
    # weight and beta's contribution into the bias (both data-independent).
    w3 = W.T.reshape(C, T, nclass)                     # (C, T, nclass)
    wg = (w3 * gamma.reshape(1, T, 1)).reshape(C * T, nclass)
    b_fold = b + jnp.einsum("t,ctn->n", beta, w3)      # (nclass,)

    kernel = functools.partial(svm_kernel, n_stat=B * C, n_chan=C)
    out = pl.pallas_call(
        kernel,
        out_shape=jax.ShapeDtypeStruct((B, nclass), jnp.float32),
        in_specs=[pl.BlockSpec(memory_space=pltpu.MemorySpace.VMEM)] * 4,
        out_specs=pl.BlockSpec(memory_space=pltpu.MemorySpace.VMEM),
    )(xs, xf, wg, b_fold.reshape(1, nclass))
    return out, None


def ref_forward(x1, x2, gamma, beta, W, b):
    """Pure-JAX reference replicating the torch forward (training-mode BN)."""
    x = jnp.concatenate([x1, x2], axis=1)              # (B, C, T)
    mean = jnp.mean(x, axis=(0, 1), keepdims=True)
    var = jnp.mean((x - mean) ** 2, axis=(0, 1), keepdims=True)
    xn = (x - mean) / jnp.sqrt(var + EPS)
    xn = xn * gamma.reshape(1, 1, -1) + beta.reshape(1, 1, -1)
    flat = xn.reshape(x.shape[0], -1)
    return flat @ W.T + b


if __name__ == "__main__":
    # xdim1 = (B, C1, T), xdim2 = (B, C2, T)
    B, C1, C2, T, nclass = 8, 4, 4, 16, 2

    key = jax.random.PRNGKey(0)
    k1, k2, k3, k4, k5, k6 = jax.random.split(key, 6)
    x1 = jax.random.normal(k1, (B, C1, T), jnp.float32)
    x2 = jax.random.normal(k2, (B, C2, T), jnp.float32)
    # Deterministic, nontrivial parameter init (BN affine + Linear).
    gamma = 1.0 + 0.1 * jax.random.normal(k3, (T,), jnp.float32)
    beta = 0.1 * jax.random.normal(k4, (T,), jnp.float32)
    W = 0.05 * jax.random.normal(k5, (nclass, (C1 + C2) * T), jnp.float32)
    b = 0.05 * jax.random.normal(k6, (nclass,), jnp.float32)

    # TODO(synk): BatchNorm running-stat updates (momentum buffers) are a training
    # side effect and are not reproduced; only the forward output is computed.

    out, none_out = svm_forward(x1, x2, gamma, beta, W, b)
    out = jax.block_until_ready(out)

    ref = ref_forward(x1, x2, gamma, beta, W, b)
    assert out.shape == (B, nclass)
    assert none_out is None
    assert jnp.allclose(out, ref, atol=1e-4, rtol=1e-4), (
        f"max abs err {jnp.max(jnp.abs(out - ref))}")

    print("KERNEL_OK")
</pallas_src>

<mosaic_0001>
module attributes {stable_mosaic.version = 11 : i64} {
  func.func @svm_kernel(%arg0: memref<64x16xf32, #tpu.memory_space<vmem>>, %arg1: memref<8x128xf32, #tpu.memory_space<vmem>>, %arg2: memref<128x2xf32, #tpu.memory_space<vmem>>, %arg3: memref<1x2xf32, #tpu.memory_space<vmem>>, %arg4: memref<8x2xf32, #tpu.memory_space<vmem>>) attributes {dimension_semantics = [], scalar_prefetch = 0 : i64, scratch_operands = 0 : i64, tpu.core_type = #tpu.core_type<tc>} {
    %c0 = arith.constant 0 : index
    %c0_0 = arith.constant 0 : index
    %0 = vector.load %arg0[%c0, %c0_0] : memref<64x16xf32, #tpu.memory_space<vmem>>, vector<64x16xf32>
    %cst = arith.constant dense<0.000000e+00> : vector<16xf32>
    %1 = vector.multi_reduction <add>, %0, %cst [0] : vector<64x16xf32> to vector<16xf32>
    %2 = vector.shape_cast %1 : vector<16xf32> to vector<1x16xf32>
    %3 = arith.mulf %0, %0 : vector<64x16xf32>
    %cst_1 = arith.constant dense<0.000000e+00> : vector<16xf32>
    %4 = vector.multi_reduction <add>, %3, %cst_1 [0] : vector<64x16xf32> to vector<16xf32>
    %5 = vector.shape_cast %4 : vector<16xf32> to vector<1x16xf32>
    %cst_2 = arith.constant 1.562500e-02 : f32
    %6 = vector.broadcast %cst_2 : f32 to vector<1x16xf32>
    %7 = arith.mulf %2, %6 : vector<1x16xf32>
    %cst_3 = arith.constant 1.562500e-02 : f32
    %8 = vector.broadcast %cst_3 : f32 to vector<1x16xf32>
    %9 = arith.mulf %5, %8 : vector<1x16xf32>
    %10 = arith.mulf %7, %7 : vector<1x16xf32>
    %11 = arith.subf %9, %10 : vector<1x16xf32>
    %cst_4 = arith.constant 0.00999999977 : f32
    %12 = vector.broadcast %cst_4 : f32 to vector<1x16xf32>
    %13 = arith.addf %11, %12 : vector<1x16xf32>
    %14 = math.rsqrt %13 : vector<1x16xf32>
    %cst_5 = arith.constant 0.000000e+00 : f32
    %15 = vector.broadcast %cst_5 : f32 to vector<1x16xf32>
    %16 = arith.subf %15, %7 : vector<1x16xf32>
    %17 = arith.mulf %16, %14 : vector<1x16xf32>
    %18 = tpu.concatenate %14, %14, %14, %14, %14, %14, %14, %14 in 1 : vector<1x16xf32>, vector<1x16xf32>, vector<1x16xf32>, vector<1x16xf32>, vector<1x16xf32>, vector<1x16xf32>, vector<1x16xf32>, vector<1x16xf32> -> vector<1x128xf32>
    %19 = tpu.concatenate %17, %17, %17, %17, %17, %17, %17, %17 in 1 : vector<1x16xf32>, vector<1x16xf32>, vector<1x16xf32>, vector<1x16xf32>, vector<1x16xf32>, vector<1x16xf32>, vector<1x16xf32>, vector<1x16xf32> -> vector<1x128xf32>
    %c0_6 = arith.constant 0 : index
    %c0_7 = arith.constant 0 : index
    %20 = vector.load %arg1[%c0_6, %c0_7] : memref<8x128xf32, #tpu.memory_space<vmem>>, vector<8x128xf32>
    %21 = vector.broadcast %18 : vector<1x128xf32> to vector<8x128xf32>
    %22 = arith.mulf %20, %21 : vector<8x128xf32>
    %23 = vector.broadcast %19 : vector<1x128xf32> to vector<8x128xf32>
    %24 = arith.addf %22, %23 : vector<8x128xf32>
    %c0_8 = arith.constant 0 : index
    %c0_9 = arith.constant 0 : index
    %25 = vector.load %arg2[%c0_8, %c0_9] : memref<128x2xf32, #tpu.memory_space<vmem>>, vector<128x2xf32>
    %cst_10 = arith.constant dense<0.000000e+00> : vector<8x2xf32>
    %26 = tpu.matmul %24, %25, %cst_10 {dimension_numbers = #tpu.dot_dimension_numbers<[1], [0], [0], [1], [0, 0, 1, 1], [], []>} : vector<8x128xf32>, vector<128x2xf32>, vector<8x2xf32> -> vector<8x2xf32>
    %c0_11 = arith.constant 0 : index
    %c0_12 = arith.constant 0 : index
    %27 = vector.load %arg3[%c0_11, %c0_12] : memref<1x2xf32, #tpu.memory_space<vmem>>, vector<1x2xf32>
    %28 = vector.broadcast %27 : vector<1x2xf32> to vector<8x2xf32>
    %29 = arith.addf %26, %28 : vector<8x2xf32>
    %c0_13 = arith.constant 0 : index
    %c0_14 = arith.constant 0 : index
    %30 = vector.load %arg4[%c0_13, %c0_14] : memref<8x2xf32, #tpu.memory_space<vmem>>, vector<8x2xf32>
    tpu.vector_store %arg4[%c0_13, %c0_14], %29 {strides = array<i32>} : memref<8x2xf32, #tpu.memory_space<vmem>>, vector<8x2xf32>,
    return
  }
}

</mosaic_0001>

<bundles_post_ra>
// kernel: tpu_custom_call.1
= control target key start
LH: loop header
LB: loop body
LE: loop exit
PB: predicated region body
PF: predicated region fallthrough
CT: control target
= control target key end

     0   :  { %vm25_vm0 = vcmask 130048   ;;  %v322_v3 = vmov 0.0   ;;  %s323_s20 = smov 48   ;;  %s324_s21 = smov 16   ;;  %vm328_vm1 = vmmov 0   ;;  %vm107_vm2 = vcmask 261120   ;;  %s505_s0 = inlined_call_operand.vmem [shape: f32[64,16], index: 0, kind: input, shape index: {}]   ;;  %s506_s2 = inlined_call_operand.vmem [shape: f32[128,2], index: 2, kind: input, shape index: {}]   ;;  %s507_s1 = inlined_call_operand.vmem [shape: f32[8,128], index: 1, kind: input, shape index: {}]   ;;  %s508_s3 = inlined_call_operand.vmem [shape: f32[1,2], index: 3, kind: input, shape index: {}]   ;;  %s509_s4 = inlined_call_operand.vmem [shape: f32[8,2], index: 4, kind: output, shape index: {}]  }
   0x1   :  { %v17_v0 = vld [vmem:[%s505_s0] sm:$0xff]  ;;  %v18_v1 = vld [vmem:[%s505_s0 + $0x8] sm:$0xff]  ;;  %v19_v2 = vld [vmem:[%s505_s0 + $0x10] sm:$0xff]  ;;  %276 = vmatprep.subr.mxu0 %v322_v3  ;;  %s325_s26 = smov 32   ;;  %s326_s29 = smov 64   ;;  %308 = vmatprep.mubr.msk.f32.mxu0 %vm328_vm1, %v322_v3  ;;  %vm109_vm3 = vcmask 392192  }
   0x2   :  { %v20_v4 = vld [vmem:[%s505_s0 + $0x18] sm:$0xff]  ;;  %v26_v5 = vsel %vm25_vm0, %v17_v0, 0.0  ;;  %v27_v6 = vsel %vm25_vm0, %v18_v1, 0.0  ;;  %v29_v7 = vsel %vm25_vm0, %v19_v2, 0.0  ;;  %v47_v8 = vmul.f32 %v17_v0, %v17_v0  ;;  %v21_v9 = vld [vmem:[%s505_s0 + $0x20] sm:$0xff]  ;;  %v22_v15 = vld [vmem:[%s505_s0 + $0x28] sm:$0xff] }
   0x3   :  { %v28_v10 = vadd.f32 %v27_v6, %v26_v5  ;;  %v31_v11 = vsel %vm25_vm0, %v20_v4, 0.0  ;;  %v48_v12 = vmul.f32 %v18_v1, %v18_v1  ;;  %v49_v13 = vmul.f32 %v19_v2, %v19_v2  ;;  %v174_v14 = vld [vmem:[%s506_s2 + $0x78] sm:$0xff]  ;;  %v23_v22 = vld [vmem:[%s505_s0 + $0x30] sm:$0xff]  ;;  %v172_v2 = vld [vmem:[%s506_s2 + $0x68] sm:$0xff]  ;;  %s327_s7 = smov 80   ;;  %s329_s10 = smov 96  }
   0x4   :  { %v50_v17 = vmul.f32 %v20_v4, %v20_v4  ;;  %277 = vmatpush3.msra.mxu0 %v174_v14  ;;  %v33_v18 = vsel %vm25_vm0, %v21_v9, 0.0  ;;  %v51_v19 = vmul.f32 %v21_v9, %v21_v9  ;;  %v55_v20 = vsel %vm25_vm0, %v47_v8, 0.0  ;;  %v24_v29 = vld [vmem:[%s505_s0 + $0x38] sm:$0xff]  ;;  %v173_v1 = vld [vmem:[%s506_s2 + $0x70] sm:$0xff]  ;;  %v171_v4 = vld [vmem:[%s506_s2 + $0x60] sm:$0xff]  ;;  %s330_s15 = smov 112  }
   0x5   :  { %v30_v16 = vadd.f32 %v29_v7, %v28_v10  ;;  %v56_v21 = vsel %vm25_vm0, %v48_v12, 0.0  ;;  %278 = vmatprep.subr.mxu0 %v322_v3  ;;  %v58_v25 = vsel %vm25_vm0, %v49_v13, 0.0  ;;  %v35_v26 = vsel %vm25_vm0, %v22_v15, 0.0  ;;  %v170_v5 = vld [vmem:[%s506_s2 + $0x58] sm:$0xff]  ;;  %v169_v6 = vld [vmem:[%s506_s2 + $0x50] sm:$0xff]  ;;  %v168_v7 = vld [vmem:[%s506_s2 + $0x48] sm:$0xff] }
   0x6   :  { %v57_v24 = vadd.f32 %v56_v21, %v55_v20  ;;  %v52_v27 = vmul.f32 %v22_v15, %v22_v15  ;;  %v60_v28 = vsel %vm25_vm0, %v50_v17, 0.0  ;;  %v37_v32 = vsel %vm25_vm0, %v23_v22, 0.0  ;;  %279 = vmatpush3.msra.mxu0 %v173_v1  ;;  %v167_v10 = vld [vmem:[%s506_s2 + $0x40] sm:$0xff]  ;;  %v166_v12 = vld [vmem:[%s506_s2 + $0x38] sm:$0xff]  ;;  %v165_v13 = vld [vmem:[%s506_s2 + $0x30] sm:$0xff] }
   0x7   :  { %v32_v23 = vadd.f32 %v31_v11, %v30_v16  ;;  %v53_v33 = vmul.f32 %v23_v22, %v23_v22  ;;  %v62_v34 = vsel %vm25_vm0, %v51_v19, 0.0  ;;  %v39_v37 = vsel %vm25_vm0, %v24_v29, 0.0  ;;  %280 = vmatprep.subr.mxu0 %v322_v3  ;;  %v164_v14 = vld [vmem:[%s506_s2 + $0x28] sm:$0xff]  ;;  %v163_v15 = vld [vmem:[%s506_s2 + $0x20] sm:$0xff]  ;;  %v162_v16 = vld [vmem:[%s506_s2 + $0x18] sm:$0xff] }
   0x8   :  { %v59_v31 = vadd.f32 %v58_v25, %v57_v24  ;;  %v54_v38 = vmul.f32 %v24_v29, %v24_v29  ;;  %v64_v39 = vsel %vm25_vm0, %v52_v27, 0.0  ;;  %281 = vmatpush3.msra.mxu0 %v172_v2  ;;  %v161_v17 = vld [vmem:[%s506_s2 + $0x10] sm:$0xff]  ;;  %v159_v19 = vld [vmem:[%s506_s2] sm:$0xff]  ;;  %vm111_vm4 = vcmask 523264  }
   0x9   :  { %v34_v30 = vadd.f32 %v33_v18, %v32_v23  ;;  %v66_v42 = vsel %vm25_vm0, %v53_v33, 0.0  ;;  %282 = vmatprep.subr.mxu0 %v322_v3  ;;  %v160_v18 = vld [vmem:[%s506_s2 + $0x8] sm:$0xff]  ;;  %vm113_vm5 = vcmask 654336   ;;  %vm115_vm6 = vcmask 785408  }
   0xa   :  { %v61_v36 = vadd.f32 %v60_v28, %v59_v31  ;;  %v68_v45 = vsel %vm25_vm0, %v54_v38, 0.0  ;;  %283 = vmatpush3.msra.mxu0 %v171_v4  ;;  %vm117_vm7 = vcmask 916480   ;;  %vm252_vm8 = vcmask 15360  }
   0xb   :  { %v36_v35 = vadd.f32 %v35_v26, %v34_v30  ;;  %284 = vmatprep.subr.mxu0 %v322_v3  ;;  %v149_v26 = vlaneseq }
   0xc   :  { %v63_v41 = vadd.f32 %v62_v34, %v61_v36  ;;  %285 = vmatpush3.msra.mxu0 %v170_v5 }
   0xd   :  { %v38_v40 = vadd.f32 %v37_v32, %v36_v35  ;;  %286 = vmatprep.subr.mxu0 %v322_v3  ;;  %v150_v30 = vshrl.u32 %v149_v26, 7 }
   0xe   :  { %v65_v44 = vadd.f32 %v64_v39, %v63_v41  ;;  %287 = vmatpush3.msra.mxu0 %v169_v6 }
   0xf   :  { %v40_v43 = vadd.f32 %v39_v37, %v38_v40  ;;  %288 = vmatprep.subr.mxu0 %v322_v3  ;;  %v151_v36 = vsub.s32 0, %v150_v30 }
  0x10   :  { %v67_v47 = vadd.f32 %v66_v42, %v65_v44  ;;  %289 = vmatpush3.msra.mxu0 %v168_v7 }
  0x11   :  { %v41_v46 = vrot.slane %v40_v43, 4  ;;  %290 = vmatprep.subr.mxu0 %v322_v3 }
  0x12   :  { %v69_v49 = vadd.f32 %v68_v45, %v67_v47  ;;  %291 = vmatpush3.msra.mxu0 %v167_v10 }
  0x13   :  { %v42_v48 = vadd.f32 %v41_v46, %v40_v43  ;;  %292 = vmatprep.subr.mxu0 %v322_v3  ;;  %v148_v46 = vld [vmem:[%s507_s1] sm:$0xff] }
  0x14   :  { %v70_v51 = vrot.slane %v69_v49, 4  ;;  %293 = vmatpush3.msra.mxu0 %v166_v12 }
  0x15   :  { %v43_v50 = vrot.slane %v42_v48, 2  ;;  %294 = vmatprep.subr.mxu0 %v322_v3 }
  0x16   :  { %v71_v53 = vadd.f32 %v70_v51, %v69_v49  ;;  %295 = vmatpush3.msra.mxu0 %v165_v13 }
  0x17   :  { %v44_v52 = vadd.f32 %v43_v50, %v42_v48  ;;  %296 = vmatprep.subr.mxu0 %v322_v3 }
  0x18   :  { %v72_v55 = vrot.slane %v71_v53, 2  ;;  %297 = vmatpush3.msra.mxu0 %v164_v14 }
  0x19   :  { %v45_v54 = vrot.slane %v44_v52, 1  ;;  %298 = vmatprep.subr.mxu0 %v322_v3 }
  0x1a   :  { %v73_v57 = vadd.f32 %v72_v55, %v71_v53  ;;  %299 = vmatpush3.msra.mxu0 %v163_v15  ;;  %v258_v55 = vld [vmem:[%s508_s3] ss:$0 sm:$0xff] }
  0x1b   :  { %v46_v56 = vadd.f32 %v45_v54, %v44_v52  ;;  %300 = vmatprep.subr.mxu0 %v322_v3 }
  0x1c   :  { %v74_v58 = vrot.slane %v73_v57, 1  ;;  %301 = vmatpush3.msra.mxu0 %v162_v16 }
  0x1d   :  { %v76_v59 = vmul.f32 0.015625, %v46_v56  ;;  %302 = vmatprep.subr.mxu0 %v322_v3 }
  0x1e   :  { %v75_v60 = vadd.f32 %v74_v58, %v73_v57  ;;  %303 = vmatpush3.msra.mxu0 %v161_v17 }
  0x1f   :  { %v78_v61 = vmul.f32 %v76_v59, %v76_v59  ;;  %v82_v8 = vsub.f32 0.0, %v76_v59  ;;  %304 = vmatprep.subr.mxu0 %v322_v3 }
  0x20   :  { %v77_v62 = vmul.f32 0.015625, %v75_v60  ;;  %305 = vmatpush3.msra.mxu0 %v160_v18 }
  0x21   :  { %306 = vmatprep.subr.mxu0 %v322_v3 }
  0x22   :  { %v79_v63 = vsub.f32 %v77_v62, %v78_v61  ;;  %307 = vmatpush3.msra.mxu0 %v159_v19 }
  0x24   :  { %v80_v0 = vadd.f32 0.01, %v79_v63 }
  0x26   :  { %320 = vrsqrt.f32 %v80_v0 }
  0x33   :  { %v424_v9 = vpop.eup %320 }
  0x34   :  { %91 = vrot.lane.b32.xlu1 %v424_v9, %s323_s20  ;;  %85 = vrot.lane.b32.xlu0 %v424_v9, %s324_s21  ;;  %v433_v11 = vmul.f32 %v424_v9, %v82_v8 }
  0x38   :  { %88 = vrot.lane.b32.xlu0 %v424_v9, %s325_s26  ;;  %120 = vrot.lane.b32.xlu1 %v433_v11, %s324_s21 }
  0x3c   :  { %94 = vrot.lane.b32.xlu0 %v424_v9, %s326_s29  ;;  %123 = vrot.lane.b32.xlu1 %v433_v11, %s325_s26 }
  0x40   :  { %97 = vrot.lane.b32.xlu0 %v424_v9, %s327_s7  ;;  %126 = vrot.lane.b32.xlu1 %v433_v11, %s323_s20 }
  0x44   :  { %100 = vrot.lane.b32.xlu0 %v424_v9, %s329_s10  ;;  %129 = vrot.lane.b32.xlu1 %v433_v11, %s326_s29 }
  0x48   :  { %103 = vrot.lane.b32.xlu0 %v424_v9, %s330_s15  ;;  %132 = vrot.lane.b32.xlu1 %v433_v11, %s327_s7 }
  0x4c   :  { %135 = vrot.lane.b32.xlu0 %v433_v11, %s329_s10  ;;  %138 = vrot.lane.b32.xlu1 %v433_v11, %s330_s15 }
  0xa6   :  { %v92_v20 = vpop.permute.xlu1 %91  ;;  %v86_v21 = vpop.permute.xlu0 %85 }
  0xa7   :  { %v106_v29 = vsel %vm25_vm0, %v424_v9, %v86_v21 }
  0xaa   :  { %v89_v22 = vpop.permute.xlu0 %88  ;;  %v121_v23 = vpop.permute.xlu1 %120 }
  0xab   :  { %v108_v3 = vsel %vm107_vm2, %v106_v29, %v89_v22  ;;  %v141_v37 = vsel %vm25_vm0, %v433_v11, %v121_v23 }
  0xac   :  { %v110_v33 = vsel %vm109_vm3, %v108_v3, %v92_v20 }
  0xae   :  { %v95_v24 = vpop.permute.xlu0 %94  ;;  %v124_v25 = vpop.permute.xlu1 %123 }
  0xaf   :  { %v112_v34 = vsel %vm111_vm4, %v110_v33, %v95_v24  ;;  %v142_v41 = vsel %vm107_vm2, %v141_v37, %v124_v25 }
  0xb2   :  { %v98_v27 = vpop.permute.xlu0 %97  ;;  %v127_v28 = vpop.permute.xlu1 %126 }
  0xb3   :  { %v114_v35 = vsel %vm113_vm5, %v112_v34, %v98_v27  ;;  %v143_v43 = vsel %vm109_vm3, %v142_v41, %v127_v28 }
  0xb6   :  { %v101_v31 = vpop.permute.xlu0 %100  ;;  %v130_v32 = vpop.permute.xlu1 %129 }
  0xb7   :  { %v116_v38 = vsel %vm115_vm6, %v114_v35, %v101_v31  ;;  %v144_v44 = vsel %vm111_vm4, %v143_v43, %v130_v32 }
  0xba   :  { %v104_v39 = vpop.permute.xlu0 %103  ;;  %v133_v40 = vpop.permute.xlu1 %132 }
  0xbb   :  { %v118_v42 = vsel %vm117_vm7, %v116_v38, %v104_v39  ;;  %v145_v47 = vsel %vm113_vm5, %v144_v44, %v133_v40 }
  0xbc   :  { %v152_v45 = vrot.slane %v118_v42, %v151_v36 }
  0xbe   :  { %v136_v48 = vpop.permute.xlu0 %135  ;;  %v139_v49 = vpop.permute.xlu1 %138  ;;  %v153_v52 = vmul.f32 %v152_v45, %v148_v46 }
  0xbf   :  { %v146_v50 = vsel %vm115_vm6, %v145_v47, %v136_v48 }
  0xc0   :  { %v147_v51 = vsel %vm117_vm7, %v146_v50, %v139_v49 }
  0xc1   :  { %v157_v53 = vrot.slane %v147_v51, %v151_v36 }
  0xc3   :  { %v158_v54 = vadd.f32 %v157_v53, %v153_v52 }
  0xc5   :  { %309 = vmatmul.mubr.f32.vlgmr.msra.gmra.mxu0 %v158_v54 }
 0x185   :  { %v248_v56 = vpop.f32.mrf.mxu0 }
 0x186   :  { %v249_v57 = vadd.f32 %v258_v55, %v248_v56 }
 0x187   :  { %v310_v58 = vpop.f32.mrf.mxu0 }
 0x188   :  { %253 = vst.msk [vmem:[%s509_s4] sm:$0xff] %vm252_vm8, %v249_v57 }

</bundles_post_ra>
